<compile_context>
chip_gen: v7x
topology: tpu7x:2x2x1
jax: 0.10.0
libtpu: 0.0.40
codegen_flags: <defaults>
</compile_context>

<pallas_src>
import jax
import jax.numpy as jnp
from jax.experimental import pallas as pl
from jax.experimental.pallas import tpu as pltpu


def _round_up(x, m):
    return ((x + m - 1) // m) * m


def _make_kernel(n_rows, tn, steps, need_mask):
    def kernel(i1_ref, i2_ref, y_ref, out_ref, acc_ref):
        s = pl.program_id(0)   # shard (parallel)
        i = pl.program_id(1)   # step within shard (arbitrary / reduction)

        @pl.when(i == 0)
        def _():
            acc_ref[0] = jnp.float32(0.0)

        # Upcast in-kernel (inputs may be bf16); keep all math in f32.
        a = i1_ref[...].astype(jnp.float32)                   # (TN, D)
        b = i2_ref[...].astype(jnp.float32)                   # (TN, D)
        y = y_ref[...].astype(jnp.float32)                    # (TN, 1)

        diff = a - b + 1e-6                                   # eps as in torch.pairwise_distance
        dist_sq = jnp.sum(diff * diff, axis=-1, keepdims=True)  # (TN, 1)
        dist = jnp.sqrt(dist_sq)
        margin = jnp.maximum(2.0 - dist, 0.0)
        term = (1.0 - y) * dist_sq + y * (margin * margin)    # (TN, 1)

        if need_mask:
            blk = s * steps + i
            row = blk * tn + jax.lax.broadcasted_iota(jnp.int32, (tn, 1), 0)
            term = jnp.where(row < n_rows, term, 0.0)

        acc_ref[0] += jnp.sum(term)

        @pl.when(i == steps - 1)
        def _():
            out_ref[0, 0] = acc_ref[0]

    return kernel


def contrastive_loss(i1, i2, y):
    N, D = i1.shape
    assert i2.shape == (N, D)
    y = y.reshape(N, 1)

    # Tile sizing: keep 2 inputs x 2 pipeline buffers x (TN x D) under ~8 MiB so it
    # fits comfortably in scoped VMEM on every generation (incl. v7x's smaller VMEM).
    itemsize = max(jnp.dtype(i1.dtype).itemsize, jnp.dtype(i2.dtype).itemsize)
    budget = 8 * 1024 * 1024
    tn_cap = max(8, ((budget // (4 * D * itemsize)) // 8) * 8)
    TN = int(min(512, tn_cap, _round_up(N, 8)))

    padded_N = _round_up(N, TN)
    total_steps = padded_N // TN
    # Split across 2 TensorCores (v7x) when there is enough work; harmless elsewhere.
    shards = 2 if (total_steps >= 2 and total_steps % 2 == 0) else 1
    steps = total_steps // shards
    need_mask = padded_N != N

    if need_mask:
        pad = padded_N - N
        i1 = jnp.pad(i1, ((0, pad), (0, 0)))
        i2 = jnp.pad(i2, ((0, pad), (0, 0)))
        y = jnp.pad(y, ((0, pad), (0, 0)))

    kernel = _make_kernel(N, TN, steps, need_mask)

    partials = pl.pallas_call(
        kernel,
        out_shape=jax.ShapeDtypeStruct((shards, 1), jnp.float32),
        grid_spec=pltpu.PrefetchScalarGridSpec(
            num_scalar_prefetch=0,
            grid=(shards, steps),
            in_specs=[
                pl.BlockSpec((TN, D), lambda s, i: (s * steps + i, 0)),
                pl.BlockSpec((TN, D), lambda s, i: (s * steps + i, 0)),
                pl.BlockSpec((TN, 1), lambda s, i: (s * steps + i, 0)),
            ],
            out_specs=pl.BlockSpec(
                (1, 1), lambda s, i: (s, 0), memory_space=pltpu.MemorySpace.SMEM
            ),
            scratch_shapes=[pltpu.SMEM((1,), jnp.float32)],
        ),
        compiler_params=pltpu.CompilerParams(
            dimension_semantics=("parallel", "arbitrary"),
            vmem_limit_bytes=32 * 1024 * 1024,
        ),
    )(i1, i2, y)

    # Finalize: single divide by the true (unpadded) row count, outside the hot loop.
    return jnp.sum(partials) / jnp.float32(N)


def contrastive_loss_ref(i1, i2, y):
    # Pure-JAX reference mirroring the PyTorch module.
    i1 = i1.astype(jnp.float32)
    i2 = i2.astype(jnp.float32)
    y = y.astype(jnp.float32)
    diff = i1 - i2 + 1e-6
    dist = jnp.sqrt(jnp.sum(diff * diff, axis=-1, keepdims=True))
    return jnp.mean((1.0 - y) * dist**2 + y * jnp.maximum(2.0 - dist, 0.0) ** 2)


if __name__ == "__main__":
    # Small siamese-network-style embeddings: batch N=8, embedding dim D=32.
    key = jax.random.PRNGKey(0)
    k1, k2, k3 = jax.random.split(key, 3)
    i1 = jax.random.normal(k1, (8, 32), dtype=jnp.float32)
    i2 = jax.random.normal(k2, (8, 32), dtype=jnp.float32)
    y = jax.random.bernoulli(k3, p=0.5, shape=(8, 1)).astype(jnp.float32)

    loss = contrastive_loss(i1, i2, y)
    jax.block_until_ready(loss)

    ref = contrastive_loss_ref(i1, i2, y)
    assert jnp.allclose(loss, ref, rtol=1e-5, atol=1e-5), (loss, ref)
    print("KERNEL_OK")
</pallas_src>

<mosaic_0001>
module attributes {stable_mosaic.version = 11 : i64} {
  func.func @kernel(%arg0: i32, %arg1: i32, %arg2: memref<8x32xf32, #tpu.memory_space<vmem>>, %arg3: memref<8x32xf32, #tpu.memory_space<vmem>>, %arg4: memref<8x1xf32, #tpu.memory_space<vmem>>, %arg5: memref<1x1xf32, #tpu.memory_space<smem>>, %arg6: memref<1xf32, #tpu.memory_space<smem>>) attributes {dimension_semantics = [#tpu.dimension_semantics<parallel>, #tpu.dimension_semantics<arbitrary>], iteration_bounds = array<i64: 1, 1>, scalar_prefetch = 0 : i64, scratch_operands = 1 : i64, tpu.core_type = #tpu.core_type<tc>, window_params = [{transform_indices = @transform_0, window_bounds = array<i64: 8, 32>}, {transform_indices = @transform_1, window_bounds = array<i64: 8, 32>}, {transform_indices = @transform_2, window_bounds = array<i64: 8, 1>}, {transform_indices = @transform_3, window_bounds = array<i64: 1, 1>}]} {
    %c0_i32 = arith.constant 0 : i32
    %0 = arith.cmpi eq, %arg1, %c0_i32 : i32
    %1 = arith.extui %0 : i1 to i32
    %c0_i32_0 = arith.constant 0 : i32
    %2 = arith.cmpi ne, %1, %c0_i32_0 : i32
    scf.if %2 {
      %cst_15 = arith.constant 0.000000e+00 : f32
      %c0_16 = arith.constant 0 : index
      %33 = memref.load %arg6[%c0_16] : memref<1xf32, #tpu.memory_space<smem>>
      memref.store %cst_15, %arg6[%c0_16] : memref<1xf32, #tpu.memory_space<smem>>
    } else {
    }
    %c0 = arith.constant 0 : index
    %c0_1 = arith.constant 0 : index
    %3 = vector.load %arg2[%c0, %c0_1] : memref<8x32xf32, #tpu.memory_space<vmem>>, vector<8x32xf32>
    %c0_2 = arith.constant 0 : index
    %c0_3 = arith.constant 0 : index
    %4 = vector.load %arg3[%c0_2, %c0_3] : memref<8x32xf32, #tpu.memory_space<vmem>>, vector<8x32xf32>
    %c0_4 = arith.constant 0 : index
    %c0_5 = arith.constant 0 : index
    %5 = vector.load %arg4[%c0_4, %c0_5] : memref<8x1xf32, #tpu.memory_space<vmem>>, vector<8x1xf32>
    %6 = arith.subf %3, %4 : vector<8x32xf32>
    %cst = arith.constant 9.99999997E-7 : f32
    %7 = vector.broadcast %cst : f32 to vector<8x32xf32>
    %8 = arith.addf %6, %7 : vector<8x32xf32>
    %9 = arith.mulf %8, %8 : vector<8x32xf32>
    %cst_6 = arith.constant dense<0.000000e+00> : vector<8xf32>
    %10 = vector.multi_reduction <add>, %9, %cst_6 [1] : vector<8x32xf32> to vector<8xf32>
    %11 = vector.shape_cast %10 : vector<8xf32> to vector<8x1xf32>
    %12 = math.sqrt %11 : vector<8x1xf32>
    %cst_7 = arith.constant 2.000000e+00 : f32
    %13 = vector.broadcast %cst_7 : f32 to vector<8x1xf32>
    %14 = arith.subf %13, %12 : vector<8x1xf32>
    %cst_8 = arith.constant 0.000000e+00 : f32
    %15 = vector.broadcast %cst_8 : f32 to vector<8x1xf32>
    %16 = arith.maximumf %14, %15 : vector<8x1xf32>
    %cst_9 = arith.constant 1.000000e+00 : f32
    %17 = vector.broadcast %cst_9 : f32 to vector<8x1xf32>
    %18 = arith.subf %17, %5 : vector<8x1xf32>
    %19 = arith.mulf %18, %11 : vector<8x1xf32>
    %20 = arith.mulf %16, %16 : vector<8x1xf32>
    %21 = arith.mulf %5, %20 : vector<8x1xf32>
    %22 = arith.addf %19, %21 : vector<8x1xf32>
    %c0_10 = arith.constant 0 : index
    %23 = memref.load %arg6[%c0_10] : memref<1xf32, #tpu.memory_space<smem>>
    %24 = vector.shape_cast %22 : vector<8x1xf32> to vector<1x8x1xf32>
    %cst_11 = arith.constant dense<0.000000e+00> : vector<1xf32>
    %25 = vector.multi_reduction <add>, %24, %cst_11 [1, 2] : vector<1x8x1xf32> to vector<1xf32>
    %26 = vector.shape_cast %25 : vector<1xf32> to vector<1x1x1xf32>
    %27 = vector.extract %26[0, 0, 0] : f32 from vector<1x1x1xf32>
    %28 = arith.addf %23, %27 : f32
    %c0_12 = arith.constant 0 : index
    %29 = memref.load %arg6[%c0_12] : memref<1xf32, #tpu.memory_space<smem>>
    memref.store %28, %arg6[%c0_12] : memref<1xf32, #tpu.memory_space<smem>>
    %c0_i32_13 = arith.constant 0 : i32
    %30 = arith.cmpi eq, %arg1, %c0_i32_13 : i32
    %31 = arith.extui %30 : i1 to i32
    %c0_i32_14 = arith.constant 0 : i32
    %32 = arith.cmpi ne, %31, %c0_i32_14 : i32
    scf.if %32 {
      %c0_15 = arith.constant 0 : index
      %33 = memref.load %arg6[%c0_15] : memref<1xf32, #tpu.memory_space<smem>>
      %c0_16 = arith.constant 0 : index
      %c0_17 = arith.constant 0 : index
      %34 = memref.load %arg5[%c0_16, %c0_17] : memref<1x1xf32, #tpu.memory_space<smem>>
      memref.store %33, %arg5[%c0_16, %c0_17] : memref<1x1xf32, #tpu.memory_space<smem>>
    } else {
    }
    return
  }
  func.func @transform_0(%arg0: i32, %arg1: i32) -> (i32, i32) {
    %c1_i32 = arith.constant 1 : i32
    %0 = arith.muli %arg0, %c1_i32 : i32
    %1 = arith.addi %0, %arg1 : i32
    %c0_i32 = arith.constant 0 : i32
    %c0_i32_0 = arith.constant 0 : i32
    return %1, %c0_i32 : i32, i32
  }
  func.func @transform_1(%arg0: i32, %arg1: i32) -> (i32, i32) {
    %c1_i32 = arith.constant 1 : i32
    %0 = arith.muli %arg0, %c1_i32 : i32
    %1 = arith.addi %0, %arg1 : i32
    %c0_i32 = arith.constant 0 : i32
    %c0_i32_0 = arith.constant 0 : i32
    return %1, %c0_i32 : i32, i32
  }
  func.func @transform_2(%arg0: i32, %arg1: i32) -> (i32, i32) {
    %c1_i32 = arith.constant 1 : i32
    %0 = arith.muli %arg0, %c1_i32 : i32
    %1 = arith.addi %0, %arg1 : i32
    %c0_i32 = arith.constant 0 : i32
    %c0_i32_0 = arith.constant 0 : i32
    return %1, %c0_i32 : i32, i32
  }
  func.func @transform_3(%arg0: i32, %arg1: i32) -> (i32, i32) {
    %c0_i32 = arith.constant 0 : i32
    %c0_i32_0 = arith.constant 0 : i32
    return %arg0, %c0_i32 : i32, i32
  }
}

</mosaic_0001>

<bundles_post_ra>
// kernel: tpu_custom_call.1
= control target key start
LH: loop header
LB: loop body
LE: loop exit
PB: predicated region body
PF: predicated region fallthrough
CT: control target
= control target key end

     0   :  { %8 = vsyncpa [#allocation4], 0  ;;  %s236_s0 = inlined_call_operand.vmem [shape: f32[8,32], index: 0, kind: input, shape index: {}]   ;;  %s237_s1 = inlined_call_operand.hbm [shape: f32[8,32], index: 1, kind: input, shape index: {}]   ;;  %s238_s2 = inlined_call_operand.vmem [shape: f32[8,1], index: 2, kind: input, shape index: {}]   ;;  %s239_s3 = inlined_call_operand.hbm [shape: f32[1,1], index: 3, kind: output, shape index: {}]  }
   0x1   :  { %9 = vsyncpa [#allocation5], 0  ;;  %s184_s12 = smov [#allocation3]   ;;  %s148_s16 = scalar_lea.hbm %s237_s1, 128 }
   0x2   :  { %s27_s13 = sshll.u32 %s184_s12, 4  ;;  %p149_p0 = scmp.ne.s32.totalorder %s237_s1, %s148_s16  ;;  %s28_s13 = int_to_ptr.vmem [resolvable:$true] %s27_s13 }
   0x3   :  { %p152_p1 = scmp.lt.u32.totalorder %s148_s16, %s237_s1 }
   0x5   :  { %p154_p2 = pnand %p152_p1, %p149_p0 }
   0x7   :  { %157 = shalt.err (!%p154_p2)
}
   0x8   :  { %s158_s21 = scalar_lea.vmem %s28_s13, 128  ;;  %p163_p4 = scmp.lt.s32.totalorder %s28_s13, %s28_s13 }
   0x9   :  { %p159_p3 = scmp.ne.s32.totalorder %s28_s13, %s158_s21  ;;  %p164_p5 = scmp.lt.s32.totalorder %s158_s21, %s158_s21 }
   0xb   :  { %p165_p6 = por %p164_p5, %p163_p4 }
   0xd   :  { %p166_p7 = pnand %p165_p6, %p159_p3 }
   0xf   :  { %169 = shalt.err (!%p166_p7)
}
  0x10   :  { %30 = dma.hbm_to_vmem [thread:$0]  %s237_s1, 128, %s28_s13, [#allocation4]  }
  0x11   :  { %180 = dma.done.wait [#allocation4], 128  }
  0x12   :  { %181 = vsyncadd [#allocation4], 4294967168  ;;  %v71_v0 = vld [vmem:[%s236_s0] sm:$0xff]  ;;  %vm77_vm0 = vcmask 261120   ;;  %vm96_vm3 = vcmask 7168   ;;  %s170_s28 = scalar_lea.hbm %s239_s3, 16 }
  0x13   :  { %v72_v1 = vld [vmem:[#allocation3] sm:$0xff]  ;;  %p171_p8 = scmp.ne.s32.totalorder %s239_s3, %s170_s28  ;;  %p174_p9 = scmp.lt.u32.totalorder %s170_s28, %s239_s3 }
  0x14   :  { %v74_v2 = vsub.f32 %v71_v0, %v72_v1  ;;  %v73_v11 = vld [vmem:[%s238_s2] sm:$0xff] }
  0x15   :  { %v90_v15 = vsub.f32 1.0, %v73_v11  ;;  %p176_p10 = pnand %p174_p9, %p171_p8 }
  0x16   :  { %v75_v3 = vadd.f32 1e-06, %v74_v2 }
  0x18   :  { %v76_v4 = vmul.f32 %v75_v3, %v75_v3 }
  0x1a   :  { %v78_v5 = vsel %vm77_vm0, %v76_v4, 0.0 }
  0x1b   :  { %79 = vadd.xlane.f32.xlu0 %v78_v5 }
  0xa8   :  { %v80_v6 = vpop.xlane.xlu0 %79 }
  0xa9   :  { %146 = vrsqrt.f32 %v80_v6  ;;  %vm83_vm1 = vcmp.eq.f32.partialorder %v80_v6, inf  ;;  %v86_v9 = vand.u32 2147483648, %v80_v6  ;;  %vm85_vm2 = vcmp.eq.f32.partialorder %v80_v6, 0.0 }
  0xaa   :  { %v91_v17 = vmul.f32 %v90_v15, %v80_v6 }
  0xb3   :  { %v147_v7 = vpop.eup %146 }
  0xb4   :  { %v82_v8 = vmul.f32 %v147_v7, %v80_v6 }
  0xb6   :  { %v84_v10 = vsel %vm83_vm1, %v80_v6, %v82_v8 }
  0xb7   :  { %v87_v12 = vsel %vm85_vm2, %v86_v9, %v84_v10 }
  0xb8   :  { %v88_v13 = vsub.f32 2.0, %v87_v12 }
  0xba   :  { %v89_v14 = vmax.f32 %v88_v13, 0.0 }
  0xbc   :  { %v92_v16 = vmul.f32 %v89_v14, %v89_v14 }
  0xbe   :  { %v93_v18 = vmul.f32 %v92_v16, %v73_v11 }
  0xc0   :  { %v94_v19 = vadd.f32 %v93_v18, %v91_v17 }
  0xc2   :  { %v97_v20 = vsel %vm96_vm3, %v94_v19, 0.0 }
  0xc3   :  { %98 = vadd.xlane.f32.xlu0 %v97_v20 }
 0x150   :  { %v99_v21 = vpop.xlane.xlu0 %98 }
 0x151   :  { %v100_v22 = vrot.slane %v99_v21, 4 }
 0x153   :  { %v101_v23 = vadd.f32 %v100_v22, %v99_v21 }
 0x155   :  { %v102_v24 = vrot.slane %v101_v23, 2 }
 0x157   :  { %v103_v25 = vadd.f32 %v102_v24, %v101_v23 }
 0x159   :  { %v104_v26 = vrot.slane %v103_v25, 1 }
 0x15b   :  { %v105_v27 = vadd.f32 %v104_v26, %v103_v25 }
 0x15d   :  { %142 = vpush %v105_v27 }
 0x18e   :  { %s143_s0 = spop %142 }
 0x18f   :  { %115 = sst [smem:[#allocation6]] %s143_s0 }
 0x190   :  { %179 = shalt.err (!%p176_p10)
}
 0x191   :  { %s185_s6 = smov [#allocation6]  }
 0x192   :  { %123 = dma.smem_to_hbm %s185_s6, 16, %s239_s3, [#allocation5]  }
 0x193   :  { %182 = dma.done.wait [#allocation5], 16  }
 0x194   :  { %183 = vsyncadd [#allocation5], 4294967280 }
 0x195   :  { %127 = sfence }
 0x196   :  { %128 = vsyncpa [#allocation4], 1 }
 0x197   :  { %129 = vsyncpa [#allocation5], 1 }

</bundles_post_ra>
